<compile_context>
chip_gen: v6e
topology: v6e:2x2x1
jax: 0.10.0
libtpu: 0.0.40
codegen_flags: <defaults>
</compile_context>

<pallas_src>
import functools

import jax
import jax.numpy as jnp
from jax.experimental import pallas as pl
from jax.experimental.pallas import tpu as pltpu

NUM_LAYERS = 2
_SUBLANES = 8


def _pick_tile(dim, prefs):
    for t in prefs:
        if dim % t == 0:
            return t
    return dim  # fall back to the full dimension (always a legal block)


# ----------------------------------------------------------------------------
# Kernel 1: hoisted layer-0 input projection  gates_x = x @ W_ih0^T + b0
# Standard tiled matmul with f32 accumulator scratch (grid: M, N, K tiles).
# ----------------------------------------------------------------------------
def _proj_kernel(x_ref, w_ref, b_ref, o_ref, acc_ref):
    @pl.when(pl.program_id(2) == 0)
    def _():
        acc_ref[...] = jnp.zeros_like(acc_ref)

    acc_ref[...] += jnp.dot(x_ref[...], w_ref[...],
                            preferred_element_type=jnp.float32)

    @pl.when(pl.program_id(2) == pl.num_programs(2) - 1)
    def _():
        o_ref[...] = acc_ref[...] + b_ref[...]


def input_projection(x2d_bf16, w_t_bf16, bias_row):
    """x2d: (M, K) bf16, w_t: (K, 4H) bf16, bias: (1, 4H) f32 -> (M, 4H) f32."""
    M, K = x2d_bf16.shape
    N = w_t_bf16.shape[1]
    tm = _pick_tile(M, (256, 128, 64, 32, 16, 8))
    tn = _pick_tile(N, (512, 256, 128))
    tk = _pick_tile(K, (512, 256, 128, 64))
    vmem = (2 * tm * tk * 2 + 2 * tk * tn * 2 + 2 * tn * 4
            + 2 * tm * tn * 4 + tm * tn * 4 + (8 << 20))
    return pl.pallas_call(
        _proj_kernel,
        out_shape=jax.ShapeDtypeStruct((M, N), jnp.float32),
        grid_spec=pltpu.PrefetchScalarGridSpec(
            num_scalar_prefetch=0,
            grid=(M // tm, N // tn, K // tk),
            in_specs=[
                pl.BlockSpec((tm, tk), lambda i, j, k: (i, k)),   # x tile (bf16)
                pl.BlockSpec((tk, tn), lambda i, j, k: (k, j)),   # W_ih0^T tile
                pl.BlockSpec((1, tn), lambda i, j, k: (0, j)),    # bias tile
            ],
            out_specs=pl.BlockSpec((tm, tn), lambda i, j, k: (i, j)),
            scratch_shapes=[pltpu.VMEM((tm, tn), jnp.float32)],
        ),
        compiler_params=pltpu.CompilerParams(
            dimension_semantics=("parallel", "parallel", "arbitrary"),
            vmem_limit_bytes=min(int(vmem), 100 << 20)),
    )(x2d_bf16, w_t_bf16, bias_row)


# ----------------------------------------------------------------------------
# Kernel 2: fused 2-layer LSTM recurrence over blocked timesteps.
# Grid iterates over time blocks; h/c carried in VMEM scratch; the recurrent
# weights are staged once (single-buffered) into VMEM scratch at grid step 0.
# ----------------------------------------------------------------------------
def _lstm2_kernel(gx_ref, whh0_hbm, wih1_hbm, whh1_hbm, b1_ref,
                  hN_ref, cN_ref,
                  whh0_s, wih1_s, whh1_s, dma_sems, h_s, c_s,
                  *, hidden_size, block_t):
    tb = pl.program_id(0)
    H = hidden_size

    @pl.when(tb == 0)
    def _():
        # Stage constant recurrent weights into VMEM once (single-buffered:
        # default pipelining would double-buffer weights that never change).
        copies = [
            pltpu.make_async_copy(whh0_hbm, whh0_s, dma_sems.at[0]),
            pltpu.make_async_copy(wih1_hbm, wih1_s, dma_sems.at[1]),
            pltpu.make_async_copy(whh1_hbm, whh1_s, dma_sems.at[2]),
        ]
        for cp in copies:
            cp.start()
        for cp in copies:
            cp.wait()
        # PyTorch nn.LSTM default: zero initial hidden / cell state.
        h_s[...] = jnp.zeros_like(h_s)
        c_s[...] = jnp.zeros_like(c_s)

    def cell(gates, c_prev):
        # PyTorch gate order: input, forget, cell(g), output.  Nonlinearities
        # and state stay in f32 (v5e has no bf16 VPU/EUP path anyway).  At the
        # real size (H = 1024) these slices are 128-lane aligned.
        i_g = jax.nn.sigmoid(gates[:, 0 * H:1 * H])
        f_g = jax.nn.sigmoid(gates[:, 1 * H:2 * H])
        g_g = jnp.tanh(gates[:, 2 * H:3 * H])
        o_g = jax.nn.sigmoid(gates[:, 3 * H:4 * H])
        c_new = f_g * c_prev + i_g * g_g
        h_new = o_g * jnp.tanh(c_new)
        return h_new, c_new

    whh0 = whh0_s[...]
    wih1 = wih1_s[...]
    whh1 = whh1_s[...]
    b1 = b1_ref[...]

    h0, c0 = h_s[0], c_s[0]
    h1, c1 = h_s[1], c_s[1]

    # Statically unrolled block of Tb timesteps per grid step (amortizes grid /
    # DMA overhead).  Only bf16 HxH(4H) recurrent matmuls sit on the serial
    # path; the big IxH(4H) projection was hoisted into `input_projection`.
    for t in range(block_t):
        gx_t = gx_ref[:, t, :]                                    # (B, 4H) f32
        g0 = gx_t + jnp.dot(h0.astype(jnp.bfloat16), whh0,
                            preferred_element_type=jnp.float32)
        h0, c0 = cell(g0, c0)
        g1 = (b1
              + jnp.dot(h0.astype(jnp.bfloat16), wih1,
                        preferred_element_type=jnp.float32)
              + jnp.dot(h1.astype(jnp.bfloat16), whh1,
                        preferred_element_type=jnp.float32))
        h1, c1 = cell(g1, c1)

    # Carry state across grid steps in scratch.
    h_s[0], c_s[0] = h0, c0
    h_s[1], c_s[1] = h1, c1

    # Write the (tiny) final-state outputs every grid step so the last HBM
    # writeback is always valid, independent of pipeline flush behaviour.
    hN_ref[0], hN_ref[1] = h0, h1
    cN_ref[0], cN_ref[1] = c0, c1


def fused_lstm2(gates_x, w_hh0_t, w_ih1_t, w_hh1_t, b1):
    """Fused 2-layer LSTM recurrence.

    gates_x : (B, S, 4H) f32  precomputed x @ W_ih0^T + b0
    w_*_t   : (H, 4H)   bf16  pre-transposed recurrent / layer-1 weights
    b1      : (1, 4H)   f32   layer-1 combined bias (b_ih1 + b_hh1)
    Returns (h_n, c_n), each (2, B, H) f32.
    """
    B, S, G = gates_x.shape
    H = G // 4
    block_t = _pick_tile(S, (16, 32, 8))      # timesteps per grid iteration
    # NOTE(v7x): with a larger padded batch a leading batch-chunk grid axis
    # marked "parallel" would occupy both TensorCores; at B <= 8 one core idles.
    vmem = (2 * B * block_t * G * 4           # pipelined gates_x blocks
            + 3 * H * G * 2                   # staged bf16 weights (one copy)
            + 2 * G * 4                       # bias block
            + 2 * NUM_LAYERS * B * H * 4      # h/c carry scratch
            + 4 * NUM_LAYERS * B * H * 4      # h_n/c_n output blocks
            + (8 << 20))
    kernel = functools.partial(_lstm2_kernel, hidden_size=H, block_t=block_t)
    out_sds = jax.ShapeDtypeStruct((NUM_LAYERS, B, H), jnp.float32)
    return pl.pallas_call(
        kernel,
        out_shape=(out_sds, out_sds),
        grid_spec=pltpu.PrefetchScalarGridSpec(
            num_scalar_prefetch=0,
            grid=(S // block_t,),
            in_specs=[
                pl.BlockSpec((B, block_t, G), lambda tb: (0, tb, 0)),  # gates_x
                pl.BlockSpec(memory_space=pl.ANY),                      # W_hh0^T
                pl.BlockSpec(memory_space=pl.ANY),                      # W_ih1^T
                pl.BlockSpec(memory_space=pl.ANY),                      # W_hh1^T
                pl.BlockSpec((1, G), lambda tb: (0, 0)),                # b1
            ],
            out_specs=(
                pl.BlockSpec((NUM_LAYERS, B, H), lambda tb: (0, 0, 0)),
                pl.BlockSpec((NUM_LAYERS, B, H), lambda tb: (0, 0, 0)),
            ),
            scratch_shapes=[
                pltpu.VMEM((H, G), jnp.bfloat16),              # W_hh0^T staged
                pltpu.VMEM((H, G), jnp.bfloat16),              # W_ih1^T staged
                pltpu.VMEM((H, G), jnp.bfloat16),              # W_hh1^T staged
                pltpu.SemaphoreType.DMA((3,)),
                pltpu.VMEM((NUM_LAYERS, B, H), jnp.float32),   # h carry
                pltpu.VMEM((NUM_LAYERS, B, H), jnp.float32),   # c carry
            ],
        ),
        compiler_params=pltpu.CompilerParams(
            dimension_semantics=("arbitrary",),                # time is serial
            vmem_limit_bytes=min(int(vmem), 100 << 20)),
    )(gates_x, w_hh0_t, w_ih1_t, w_hh1_t, b1)


# ----------------------------------------------------------------------------
# Encoder forward (matches Encoder.forward(x) -> (hidden, cell))
# ----------------------------------------------------------------------------
def encoder_forward(x, params):
    """x: (B, S, input_size) f32 -> (h_n, c_n), each (2, B, H) f32."""
    B, S, _ = x.shape
    H = params["w_hh0_t"].shape[0]

    # Pad batch to the sublane count so (B, *) VPU/MXU rows are not 75% wasted.
    B_pad = max(_SUBLANES, ((B + _SUBLANES - 1) // _SUBLANES) * _SUBLANES)
    if B_pad != B:
        x = jnp.pad(x, ((0, B_pad - B), (0, 0), (0, 0)))

    # 1) Hoisted layer-0 input projection over all timesteps (one big matmul).
    x2d = x.reshape(B_pad * S, -1).astype(jnp.bfloat16)
    gates_x = input_projection(x2d, params["w_ih0_t"], params["b0"])
    gates_x = gates_x.reshape(B_pad, S, 4 * H)   # batch-first, no transposes

    # 2) Fused 2-layer recurrence (zero initial state, nn.LSTM default).
    h_n, c_n = fused_lstm2(gates_x, params["w_hh0_t"], params["w_ih1_t"],
                           params["w_hh1_t"], params["b1"])
    return h_n[:, :B, :], c_n[:, :B, :]


# ----------------------------------------------------------------------------
# Parameter init (PyTorch-style uniform(-1/sqrt(H), 1/sqrt(H))), deterministic.
# Weights pre-transposed to (in_features, 4H) and stored in bf16; the two bias
# vectors of each layer are pre-summed and kept in f32.
# ----------------------------------------------------------------------------
def init_params(key, input_size, hidden_size):
    H = hidden_size
    bound = 1.0 / float(H) ** 0.5
    ks = jax.random.split(key, 8)

    def u(k, shape):
        return jax.random.uniform(k, shape, jnp.float32, -bound, bound)

    w_ih0 = u(ks[0], (4 * H, input_size))
    w_hh0 = u(ks[1], (4 * H, H))
    b0 = u(ks[2], (4 * H,)) + u(ks[3], (4 * H,))
    w_ih1 = u(ks[4], (4 * H, H))
    w_hh1 = u(ks[5], (4 * H, H))
    b1 = u(ks[6], (4 * H,)) + u(ks[7], (4 * H,))
    return {
        "w_ih0_t": w_ih0.T.astype(jnp.bfloat16),
        "w_hh0_t": w_hh0.T.astype(jnp.bfloat16),
        "w_ih1_t": w_ih1.T.astype(jnp.bfloat16),
        "w_hh1_t": w_hh1.T.astype(jnp.bfloat16),
        "b0": b0.reshape(1, 4 * H),
        "b1": b1.reshape(1, 4 * H),
    }


# ----------------------------------------------------------------------------
# Pure-JAX reference mirroring the kernel's bf16-operand / f32-accum math.
# ----------------------------------------------------------------------------
def encoder_forward_ref(x, params):
    B, S, _ = x.shape
    H = params["w_hh0_t"].shape[0]

    def bdot(a, b):
        return jnp.dot(a.astype(jnp.bfloat16), b,
                       preferred_element_type=jnp.float32)

    gx = (bdot(x.reshape(B * S, -1), params["w_ih0_t"]).reshape(B, S, 4 * H)
          + params["b0"])

    def cell(g, c):
        i_g = jax.nn.sigmoid(g[:, 0 * H:1 * H])
        f_g = jax.nn.sigmoid(g[:, 1 * H:2 * H])
        g_g = jnp.tanh(g[:, 2 * H:3 * H])
        o_g = jax.nn.sigmoid(g[:, 3 * H:4 * H])
        c_new = f_g * c + i_g * g_g
        return o_g * jnp.tanh(c_new), c_new

    h0 = jnp.zeros((B, H), jnp.float32)
    c0 = jnp.zeros((B, H), jnp.float32)
    h1 = jnp.zeros((B, H), jnp.float32)
    c1 = jnp.zeros((B, H), jnp.float32)
    for t in range(S):
        g0 = gx[:, t, :] + bdot(h0, params["w_hh0_t"])
        h0, c0 = cell(g0, c0)
        g1 = (params["b1"] + bdot(h0, params["w_ih1_t"])
              + bdot(h1, params["w_hh1_t"]))
        h1, c1 = cell(g1, c1)
    return jnp.stack([h0, h1]), jnp.stack([c0, c1])


if __name__ == "__main__":
    # Small shapes consistent with the module (scaled down from 4096/1024).
    batch, seq = 2, 32
    input_size, hidden_size = 64, 32

    key = jax.random.PRNGKey(0)
    key, kx = jax.random.split(key)
    x = jax.random.normal(kx, (batch, seq, input_size), jnp.float32)
    params = init_params(key, input_size, hidden_size)

    h_n, c_n = encoder_forward(x, params)
    jax.block_until_ready((h_n, c_n))

    h_ref, c_ref = encoder_forward_ref(x, params)
    assert h_n.shape == (NUM_LAYERS, batch, hidden_size)
    assert c_n.shape == (NUM_LAYERS, batch, hidden_size)
    assert jnp.allclose(h_n, h_ref, atol=2e-3, rtol=2e-3), (
        float(jnp.max(jnp.abs(h_n - h_ref))))
    assert jnp.allclose(c_n, c_ref, atol=2e-3, rtol=2e-3), (
        float(jnp.max(jnp.abs(c_n - c_ref))))

    print("KERNEL_OK")
</pallas_src>

<mosaic_0001>
module attributes {stable_mosaic.version = 11 : i64} {
  func.func @_proj_kernel(%arg0: i32, %arg1: i32, %arg2: i32, %arg3: memref<256x64xbf16, #tpu.memory_space<vmem>>, %arg4: memref<64x128xbf16, #tpu.memory_space<vmem>>, %arg5: memref<1x128xf32, #tpu.memory_space<vmem>>, %arg6: memref<256x128xf32, #tpu.memory_space<vmem>>, %arg7: memref<256x128xf32, #tpu.memory_space<vmem>>) attributes {dimension_semantics = [#tpu.dimension_semantics<parallel>, #tpu.dimension_semantics<parallel>, #tpu.dimension_semantics<arbitrary>], iteration_bounds = array<i64: 1, 1, 1>, scalar_prefetch = 0 : i64, scratch_operands = 1 : i64, tpu.core_type = #tpu.core_type<tc>, window_params = [{transform_indices = @transform_0, window_bounds = array<i64: 256, 64>}, {transform_indices = @transform_1, window_bounds = array<i64: 64, 128>}, {transform_indices = @transform_2, window_bounds = array<i64: 1, 128>}, {transform_indices = @transform_3, window_bounds = array<i64: 256, 128>}]} {
    %c0_i32 = arith.constant 0 : i32
    %0 = arith.cmpi eq, %arg2, %c0_i32 : i32
    %1 = arith.extui %0 : i1 to i32
    %c0_i32_0 = arith.constant 0 : i32
    %2 = arith.cmpi ne, %1, %c0_i32_0 : i32
    scf.if %2 {
      %cst_10 = arith.constant 0.000000e+00 : f32
      %12 = vector.broadcast %cst_10 : f32 to vector<256x128xf32>
      %c0_11 = arith.constant 0 : index
      %c0_12 = arith.constant 0 : index
      %13 = vector.load %arg7[%c0_11, %c0_12] : memref<256x128xf32, #tpu.memory_space<vmem>>, vector<256x128xf32>
      tpu.vector_store %arg7[%c0_11, %c0_12], %12 {strides = array<i32>} : memref<256x128xf32, #tpu.memory_space<vmem>>, vector<256x128xf32>,
    } else {
    }
    %c0 = arith.constant 0 : index
    %c0_1 = arith.constant 0 : index
    %3 = vector.load %arg7[%c0, %c0_1] : memref<256x128xf32, #tpu.memory_space<vmem>>, vector<256x128xf32>
    %c0_2 = arith.constant 0 : index
    %c0_3 = arith.constant 0 : index
    %4 = vector.load %arg3[%c0_2, %c0_3] : memref<256x64xbf16, #tpu.memory_space<vmem>>, vector<256x64xbf16>
    %c0_4 = arith.constant 0 : index
    %c0_5 = arith.constant 0 : index
    %5 = vector.load %arg4[%c0_4, %c0_5] : memref<64x128xbf16, #tpu.memory_space<vmem>>, vector<64x128xbf16>
    %cst = arith.constant dense<0.000000e+00> : vector<256x128xf32>
    %6 = tpu.matmul %4, %5, %cst {dimension_numbers = #tpu.dot_dimension_numbers<[1], [0], [0], [1], [0, 0, 1, 1], [], []>} : vector<256x64xbf16>, vector<64x128xbf16>, vector<256x128xf32> -> vector<256x128xf32>
    %7 = arith.addf %3, %6 : vector<256x128xf32>
    %c0_6 = arith.constant 0 : index
    %c0_7 = arith.constant 0 : index
    %8 = vector.load %arg7[%c0_6, %c0_7] : memref<256x128xf32, #tpu.memory_space<vmem>>, vector<256x128xf32>
    tpu.vector_store %arg7[%c0_6, %c0_7], %7 {strides = array<i32>} : memref<256x128xf32, #tpu.memory_space<vmem>>, vector<256x128xf32>,
    %c0_i32_8 = arith.constant 0 : i32
    %9 = arith.cmpi eq, %arg2, %c0_i32_8 : i32
    %10 = arith.extui %9 : i1 to i32
    %c0_i32_9 = arith.constant 0 : i32
    %11 = arith.cmpi ne, %10, %c0_i32_9 : i32
    scf.if %11 {
      %c0_10 = arith.constant 0 : index
      %c0_11 = arith.constant 0 : index
      %12 = vector.load %arg7[%c0_10, %c0_11] : memref<256x128xf32, #tpu.memory_space<vmem>>, vector<256x128xf32>
      %c0_12 = arith.constant 0 : index
      %c0_13 = arith.constant 0 : index
      %13 = vector.load %arg5[%c0_12, %c0_13] : memref<1x128xf32, #tpu.memory_space<vmem>>, vector<1x128xf32>
      %14 = vector.broadcast %13 : vector<1x128xf32> to vector<256x128xf32>
      %15 = arith.addf %12, %14 : vector<256x128xf32>
      %c0_14 = arith.constant 0 : index
      %c0_15 = arith.constant 0 : index
      %16 = vector.load %arg6[%c0_14, %c0_15] : memref<256x128xf32, #tpu.memory_space<vmem>>, vector<256x128xf32>
      tpu.vector_store %arg6[%c0_14, %c0_15], %15 {strides = array<i32>} : memref<256x128xf32, #tpu.memory_space<vmem>>, vector<256x128xf32>,
    } else {
    }
    return
  }
  func.func @transform_0(%arg0: i32, %arg1: i32, %arg2: i32) -> (i32, i32) {
    %c0_i32 = arith.constant 0 : i32
    return %arg0, %arg2 : i32, i32
  }
  func.func @transform_1(%arg0: i32, %arg1: i32, %arg2: i32) -> (i32, i32) {
    %c0_i32 = arith.constant 0 : i32
    return %arg2, %arg1 : i32, i32
  }
  func.func @transform_2(%arg0: i32, %arg1: i32, %arg2: i32) -> (i32, i32) {
    %c0_i32 = arith.constant 0 : i32
    %c0_i32_0 = arith.constant 0 : i32
    return %c0_i32, %arg1 : i32, i32
  }
  func.func @transform_3(%arg0: i32, %arg1: i32, %arg2: i32) -> (i32, i32) {
    %c0_i32 = arith.constant 0 : i32
    return %arg0, %arg1 : i32, i32
  }
}

</mosaic_0001>

<bundles_post_ra>
// kernel: tpu_custom_call.1
= control target key start
LH: loop header
LB: loop body
LE: loop exit
PB: predicated region body
PF: predicated region fallthrough
CT: control target
= control target key end

     0   :  { %vm228_vm0 = vcmask 523264   ;;  %s913_s0 = inlined_call_operand.vmem [shape: bf16[256,64], index: 0, kind: input, shape index: {}]   ;;  %s914_s1 = inlined_call_operand.vmem [shape: bf16[64,128], index: 1, kind: input, shape index: {}]   ;;  %s915_s2 = inlined_call_operand.vmem [shape: f32[1,128], index: 2, kind: input, shape index: {}]   ;;  %s916_s3 = inlined_call_operand.hbm [shape: f32[256,128], index: 3, kind: output, shape index: {}]  }
   0x1   :  { %v732_v0 = vld [vmem:[%s914_s1 + $0x18] sm:$0xff]   ;;  %v733_v1 = vld [vmem:[%s914_s1 + $0x10] sm:$0xff]   ;;  %v734_v2 = vld [vmem:[%s914_s1 + $0x8] sm:$0xff]  }
   0x2   :  { %681 = vmatprep.subr.bf16.mxu0 %v732_v0  ;;  %721 = vmatprep.subr.bf16.mxu1 %v732_v0  ;;  %v736_v3 = vld [vmem:[%s913_s0] sm:$0xff]   ;;  %v738_v6 = vld [vmem:[%s913_s0 + $0x8] sm:$0xff]   ;;  %v740_v8 = vld [vmem:[%s913_s0 + $0x10] sm:$0xff]  }
   0x3   :  { %682 = vmatpush3.bf16.msra.mxu0 %v732_v0  ;;  %725 = vmatpush3.bf16.msra.mxu1 %v732_v0  ;;  %v737_v4 = vld [vmem:[%s913_s0 + $0x40] sm:$0xff]   ;;  %v739_v7 = vld [vmem:[%s913_s0 + $0x48] sm:$0xff]   ;;  %v741_v9 = vld [vmem:[%s913_s0 + $0x50] sm:$0xff]  }
   0x4   :  { %683 = vmatprep.subr.bf16.mxu0 %v733_v1  ;;  %722 = vmatprep.subr.bf16.mxu1 %v733_v1  ;;  %v735_v5 = vld [vmem:[%s914_s1] sm:$0xff]  }
   0x5   :  { %689 = vmatprep.mubr.msk.bf16.mxu0 %vm228_vm0, %v736_v3  ;;  %705 = vmatprep.mubr.msk.bf16.mxu1 %vm228_vm0, %v737_v4 }
   0x7   :  { %684 = vmatpush3.bf16.msra.mxu0 %v733_v1  ;;  %726 = vmatpush3.bf16.msra.mxu1 %v733_v1 }
   0x8   :  { %685 = vmatprep.subr.bf16.mxu0 %v734_v2  ;;  %723 = vmatprep.subr.bf16.mxu1 %v734_v2 }
   0xb   :  { %686 = vmatpush3.bf16.msra.mxu0 %v734_v2  ;;  %727 = vmatpush3.bf16.msra.mxu1 %v734_v2 }
   0xc   :  { %687 = vmatprep.subr.bf16.mxu0 %v735_v5  ;;  %724 = vmatprep.subr.bf16.mxu1 %v735_v5 }
   0xf   :  { %688 = vmatpush3.bf16.msra.mxu0 %v735_v5  ;;  %728 = vmatpush3.bf16.msra.mxu1 %v735_v5 }
  0x12   :  { %690 = vmatmul.mubr.msk.bf16.vlgmr.msra.gmra.mxu0 %vm228_vm0, %v738_v6  ;;  %706 = vmatmul.mubr.msk.bf16.vlgmr.msra.gmra.mxu1 %vm228_vm0, %v739_v7 }
  0x13   :  { %693 = vmatprep.mubr.msk.bf16.mxu0 %vm228_vm0, %v740_v8  ;;  %709 = vmatprep.mubr.msk.bf16.mxu1 %vm228_vm0, %v741_v9 }
  0x14   :  { %8 = vsyncpa [#allocation4], 0  ;;  %v742_v10 = vld [vmem:[%s913_s0 + $0x18] sm:$0xff]   ;;  %v744_v12 = vld [vmem:[%s913_s0 + $0x20] sm:$0xff]  }
  0x15   :  { %v743_v11 = vld [vmem:[%s913_s0 + $0x58] sm:$0xff]   ;;  %v745_v13 = vld [vmem:[%s913_s0 + $0x60] sm:$0xff]   ;;  %v746_v14 = vld [vmem:[%s913_s0 + $0x28] sm:$0xff]  }
  0x16   :  { %v747_v15 = vld [vmem:[%s913_s0 + $0x68] sm:$0xff]   ;;  %v748_v16 = vld [vmem:[%s913_s0 + $0x30] sm:$0xff]   ;;  %v750_v18 = vld [vmem:[%s913_s0 + $0x38] sm:$0xff]  }
  0x17   :  { %v749_v17 = vld [vmem:[%s913_s0 + $0x70] sm:$0xff]   ;;  %v751_v19 = vld [vmem:[%s913_s0 + $0x78] sm:$0xff]   ;;  %v876_v20 = vld [vmem:[%s915_s2] ss:$0 sm:$0xff]  ;;  %s774_s0 = smov [#allocation3]  }
  0x18   :  { %s613_s2 = sshll.u32 %s774_s0, 4  ;;  %s614_s2 = int_to_ptr.vmem [resolvable:$true] %s613_s2 }
  0x19   :  { %s752_s26 = scalar_lea.vmem %s614_s2, 4096  ;;  %p757_p1 = scmp.lt.s32.totalorder %s614_s2, %s614_s2 }
  0x1a   :  { %694 = vmatmul.mubr.msk.bf16.gmra.mxu0 %vm228_vm0, %v742_v10  ;;  %710 = vmatmul.mubr.msk.bf16.gmra.mxu1 %vm228_vm0, %v743_v11  ;;  %p753_p0 = scmp.ne.s32.totalorder %s614_s2, %s752_s26  ;;  %p758_p2 = scmp.lt.s32.totalorder %s752_s26, %s752_s26 }
  0x1b   :  { %697 = vmatprep.mubr.msk.bf16.mxu0 %vm228_vm0, %v744_v12  ;;  %713 = vmatprep.mubr.msk.bf16.mxu1 %vm228_vm0, %v745_v13 }
  0x1c   :  { %p759_p3 = por %p758_p2, %p757_p1 }
  0x1e   :  { %p760_p4 = pnand %p759_p3, %p753_p0 }
  0x22   :  { %698 = vmatmul.mubr.msk.bf16.gmra.mxu0 %vm228_vm0, %v746_v14  ;;  %714 = vmatmul.mubr.msk.bf16.gmra.mxu1 %vm228_vm0, %v747_v15 }
  0x23   :  { %701 = vmatprep.mubr.msk.bf16.mxu0 %vm228_vm0, %v748_v16  ;;  %717 = vmatprep.mubr.msk.bf16.mxu1 %vm228_vm0, %v749_v17 }
  0x2a   :  { %702 = vmatmul.mubr.msk.bf16.gmra.mxu0 %vm228_vm0, %v750_v18  ;;  %718 = vmatmul.mubr.msk.bf16.gmra.mxu1 %vm228_vm0, %v751_v19 }
  0xd2   :  { %v691_v21 = vpop.f32.mrf.mxu0  ;;  %v707_v22 = vpop.f32.mrf.mxu1 }
  0xd3   :  { %v546_v23 = vadd.f32 %v691_v21, %v876_v20  ;;  %v562_v24 = vadd.f32 %v707_v22, %v876_v20 }
  0xd4   :  { %v311_v25 = vpop.f32.mrf.mxu0  ;;  %v375_v26 = vpop.f32.mrf.mxu1 }
  0xd5   :  { %578 = vst [vmem:[#allocation3 + $0x10] sm:$0xff] %v546_v23  ;;  %594 = vst [vmem:[#allocation3 + $0x90] sm:$0xff] %v562_v24  ;;  %v544_v27 = vadd.f32 %v876_v20, %v311_v25  ;;  %v560_v28 = vadd.f32 %v876_v20, %v375_v26 }
  0xd6   :  { %v692_v29 = vpop.f32.mrf.mxu0  ;;  %v708_v30 = vpop.f32.mrf.mxu1 }
  0xd7   :  { %576 = vst [vmem:[#allocation3] sm:$0xff] %v544_v27  ;;  %592 = vst [vmem:[#allocation3 + $0x80] sm:$0xff] %v560_v28  ;;  %v547_v31 = vadd.f32 %v692_v29, %v876_v20  ;;  %v563_v32 = vadd.f32 %v708_v30, %v876_v20 }
  0xd8   :  { %v314_v33 = vpop.f32.mrf.mxu0  ;;  %v378_v34 = vpop.f32.mrf.mxu1 }
  0xd9   :  { %579 = vst [vmem:[#allocation3 + $0x18] sm:$0xff] %v547_v31  ;;  %595 = vst [vmem:[#allocation3 + $0x98] sm:$0xff] %v563_v32  ;;  %v545_v35 = vadd.f32 %v876_v20, %v314_v33  ;;  %v561_v36 = vadd.f32 %v876_v20, %v378_v34 }
  0xda   :  { %v695_v37 = vpop.f32.mrf.mxu0  ;;  %v711_v38 = vpop.f32.mrf.mxu1 }
  0xdb   :  { %577 = vst [vmem:[#allocation3 + $0x8] sm:$0xff] %v545_v35  ;;  %593 = vst [vmem:[#allocation3 + $0x88] sm:$0xff] %v561_v36  ;;  %v550_v39 = vadd.f32 %v695_v37, %v876_v20  ;;  %v566_v40 = vadd.f32 %v711_v38, %v876_v20 }
  0xdc   :  { %v327_v41 = vpop.f32.mrf.mxu0  ;;  %v391_v42 = vpop.f32.mrf.mxu1 }
  0xdd   :  { %582 = vst [vmem:[#allocation3 + $0x30] sm:$0xff] %v550_v39  ;;  %598 = vst [vmem:[#allocation3 + $0xb0] sm:$0xff] %v566_v40  ;;  %v548_v43 = vadd.f32 %v876_v20, %v327_v41  ;;  %v564_v44 = vadd.f32 %v876_v20, %v391_v42 }
  0xde   :  { %v696_v45 = vpop.f32.mrf.mxu0  ;;  %v712_v46 = vpop.f32.mrf.mxu1 }
  0xdf   :  { %580 = vst [vmem:[#allocation3 + $0x20] sm:$0xff] %v548_v43  ;;  %596 = vst [vmem:[#allocation3 + $0xa0] sm:$0xff] %v564_v44  ;;  %v551_v47 = vadd.f32 %v696_v45, %v876_v20  ;;  %v567_v48 = vadd.f32 %v712_v46, %v876_v20 }
  0xe0   :  { %v330_v49 = vpop.f32.mrf.mxu0  ;;  %v394_v50 = vpop.f32.mrf.mxu1 }
  0xe1   :  { %583 = vst [vmem:[#allocation3 + $0x38] sm:$0xff] %v551_v47  ;;  %599 = vst [vmem:[#allocation3 + $0xb8] sm:$0xff] %v567_v48  ;;  %v549_v51 = vadd.f32 %v876_v20, %v330_v49  ;;  %v565_v52 = vadd.f32 %v876_v20, %v394_v50 }
  0xe2   :  { %v699_v53 = vpop.f32.mrf.mxu0  ;;  %v715_v54 = vpop.f32.mrf.mxu1 }
  0xe3   :  { %581 = vst [vmem:[#allocation3 + $0x28] sm:$0xff] %v549_v51  ;;  %597 = vst [vmem:[#allocation3 + $0xa8] sm:$0xff] %v565_v52  ;;  %v554_v55 = vadd.f32 %v699_v53, %v876_v20  ;;  %v570_v56 = vadd.f32 %v715_v54, %v876_v20 }
  0xe4   :  { %v343_v57 = vpop.f32.mrf.mxu0  ;;  %v407_v58 = vpop.f32.mrf.mxu1 }
  0xe5   :  { %586 = vst [vmem:[#allocation3 + $0x50] sm:$0xff] %v554_v55  ;;  %602 = vst [vmem:[#allocation3 + $0xd0] sm:$0xff] %v570_v56  ;;  %v552_v59 = vadd.f32 %v876_v20, %v343_v57  ;;  %v568_v60 = vadd.f32 %v876_v20, %v407_v58 }
  0xe6   :  { %v700_v61 = vpop.f32.mrf.mxu0  ;;  %v716_v62 = vpop.f32.mrf.mxu1 }
  0xe7   :  { %584 = vst [vmem:[#allocation3 + $0x40] sm:$0xff] %v552_v59  ;;  %600 = vst [vmem:[#allocation3 + $0xc0] sm:$0xff] %v568_v60  ;;  %v555_v63 = vadd.f32 %v700_v61, %v876_v20  ;;  %v571_v0 = vadd.f32 %v716_v62, %v876_v20 }
  0xe8   :  { %v346_v1 = vpop.f32.mrf.mxu0  ;;  %v410_v2 = vpop.f32.mrf.mxu1 }
  0xe9   :  { %587 = vst [vmem:[#allocation3 + $0x58] sm:$0xff] %v555_v63  ;;  %603 = vst [vmem:[#allocation3 + $0xd8] sm:$0xff] %v571_v0  ;;  %v553_v3 = vadd.f32 %v876_v20, %v346_v1  ;;  %v569_v4 = vadd.f32 %v876_v20, %v410_v2 }
  0xea   :  { %v703_v5 = vpop.f32.mrf.mxu0  ;;  %v719_v6 = vpop.f32.mrf.mxu1 }
  0xeb   :  { %585 = vst [vmem:[#allocation3 + $0x48] sm:$0xff] %v553_v3  ;;  %601 = vst [vmem:[#allocation3 + $0xc8] sm:$0xff] %v569_v4  ;;  %v558_v7 = vadd.f32 %v703_v5, %v876_v20  ;;  %v574_v8 = vadd.f32 %v719_v6, %v876_v20 }
  0xec   :  { %v359_v9 = vpop.f32.mrf.mxu0  ;;  %v423_v10 = vpop.f32.mrf.mxu1 }
  0xed   :  { %590 = vst [vmem:[#allocation3 + $0x70] sm:$0xff] %v558_v7  ;;  %606 = vst [vmem:[#allocation3 + $0xf0] sm:$0xff] %v574_v8  ;;  %v556_v11 = vadd.f32 %v876_v20, %v359_v9  ;;  %v572_v12 = vadd.f32 %v876_v20, %v423_v10 }
  0xee   :  { %v704_v13 = vpop.f32.mrf.mxu0  ;;  %v720_v14 = vpop.f32.mrf.mxu1 }
  0xef   :  { %588 = vst [vmem:[#allocation3 + $0x60] sm:$0xff] %v556_v11  ;;  %604 = vst [vmem:[#allocation3 + $0xe0] sm:$0xff] %v572_v12  ;;  %v559_v15 = vadd.f32 %v704_v13, %v876_v20  ;;  %v575_v16 = vadd.f32 %v720_v14, %v876_v20 }
  0xf0   :  { %v362_v17 = vpop.f32.mrf.mxu0  ;;  %v426_v18 = vpop.f32.mrf.mxu1 }
  0xf1   :  { %591 = vst [vmem:[#allocation3 + $0x78] sm:$0xff] %v559_v15  ;;  %607 = vst [vmem:[#allocation3 + $0xf8] sm:$0xff] %v575_v16  ;;  %v557_v19 = vadd.f32 %v876_v20, %v362_v17  ;;  %v573_v21 = vadd.f32 %v876_v20, %v426_v18 }
  0xf3   :  { %589 = vst [vmem:[#allocation3 + $0x68] sm:$0xff] %v557_v19  ;;  %605 = vst [vmem:[#allocation3 + $0xe8] sm:$0xff] %v573_v21 }
  0xf4   :  { %763 = shalt.err (!%p760_p4)
}
  0xf5   :  { %s775_s27 = smov 128   ;;  %s776_s28 = smov 8  }
  0xf6   :  { %619 = dma.vmem_to_hbm [thread:$0]  %s614_s2, 4096, %s916_s3, [#allocation4], %s775_s27, %s775_s27, %s776_s28  }
  0xf7   :  { %772 = dma.done.wait [#allocation4], 4096  }
  0xf8   :  { %773 = vsyncadd [#allocation4], 4294963200 }
  0xf9   :  { %623 = vsyncpa [#allocation4], 1 }

</bundles_post_ra>
